<compile_context>
chip_gen: v6e
topology: v6e:2x2x1
jax: 0.10.0
libtpu: 0.0.40
codegen_flags: <defaults>
</compile_context>

<pallas_src>
import jax
import jax.numpy as jnp
from jax.experimental import pallas as pl
from jax.experimental.pallas import tpu as pltpu

NEGATIVE_SLOPE = 0.01

LANES = 128                 # vreg lane width: last dim = 128 -> unmasked vst
SUBLANES = 8                # f32 sublane tiling
TILE_ROWS = 8192            # (8192, 128) f32 = 4 MiB per plane per direction
MIN_STEPS = 8               # >= 4 pipelined steps per TC on a 2-TC v7x chip
SPLIT_MIN_TILE_ROWS = 1024  # only force-split if each step still moves >= 2 MiB
VMEM_LIMIT_BYTES = 48 * 1024 * 1024


def _round_up(n, m):
    return -(-n // m) * m


def _cleaky_relu_kernel(xr_ref, xi_ref, or_ref, oi_ref):
    slope = jnp.float32(NEGATIVE_SLOPE)
    xr = xr_ref[...]
    xi = xi_ref[...]
    # leaky_relu(x) == max(x, slope*x) for 0 < slope < 1 (same NaN / -0.0
    # behavior as the compare+select form).
    or_ref[...] = jnp.maximum(xr, slope * xr)
    oi_ref[...] = jnp.maximum(xi, slope * xi)


def _pick_tile_rows(rows):
    """Rows per grid step (rows is already a multiple of SUBLANES)."""
    tile = min(rows, TILE_ROWS)
    # Aim for >= MIN_STEPS grid steps so both v7x TensorCores get >= 4
    # pipelined steps each, but only when every step still moves enough data
    # (>= 2 MiB read+write across the 4 planes) to amortize the ~0.35 us
    # per-step overhead; otherwise keep one big block (no penalty on 1-TC
    # v5e/v6e for small inputs).
    split = _round_up(-(-rows // MIN_STEPS), SUBLANES)
    if split >= SPLIT_MIN_TILE_ROWS:
        tile = min(tile, split)
    return tile


@jax.jit
def cleaky_relu(x_complex):
    """LeakyReLU applied independently to real & imag parts of a complex array."""
    orig_shape = x_complex.shape
    total = x_complex.size

    # Deinterleave complex -> two f32 planes. Under jit, this (plus the
    # reshape/pad below) is the producer that allow_input_fusion lets XLA fuse
    # straight into the kernel's input DMA.
    xr = jnp.real(x_complex)
    xi = jnp.imag(x_complex)
    f32 = xr.dtype

    rows = _round_up(pl.cdiv(total, LANES), SUBLANES)
    pad = rows * LANES - total
    xr = xr.reshape(-1)
    xi = xi.reshape(-1)
    if pad:  # pad only the final partial lane row; zeros are sliced off below
        xr = jnp.pad(xr, (0, pad))
        xi = jnp.pad(xi, (0, pad))
    xr = xr.reshape(rows, LANES)
    xi = xi.reshape(rows, LANES)

    tile_rows = _pick_tile_rows(rows)
    grid = (pl.cdiv(rows, tile_rows),)
    spec = pl.BlockSpec((tile_rows, LANES), lambda i: (i, 0))

    yr, yi = pl.pallas_call(
        _cleaky_relu_kernel,
        out_shape=(
            jax.ShapeDtypeStruct((rows, LANES), f32),
            jax.ShapeDtypeStruct((rows, LANES), f32),
        ),
        grid_spec=pltpu.PrefetchScalarGridSpec(
            num_scalar_prefetch=0,
            grid=grid,
            in_specs=[spec, spec],
            out_specs=[spec, spec],
        ),
        compiler_params=pltpu.CompilerParams(
            dimension_semantics=("parallel",),
            allow_input_fusion=[True, True],
            vmem_limit_bytes=VMEM_LIMIT_BYTES,
        ),
    )(xr, xi)

    # Single fused reinterleave pass: two f32 planes -> complex output.
    yr = yr.reshape(-1)[:total].reshape(orig_shape)
    yi = yi.reshape(-1)[:total].reshape(orig_shape)
    return jax.lax.complex(yr, yi)


def _reference(x_complex):
    # Pure-XLA roofline: one elementwise fusion over the complex buffer.
    xr = jnp.real(x_complex)
    xi = jnp.imag(x_complex)
    slope = jnp.float32(NEGATIVE_SLOPE)
    return jax.lax.complex(jnp.where(xr >= 0, xr, slope * xr),
                           jnp.where(xi >= 0, xi, slope * xi))


if __name__ == "__main__":
    key = jax.random.PRNGKey(0)
    kr, ki = jax.random.split(key)
    B, C, H, W = 2, 4, 16, 16  # NCHW, complex64
    x_real = jax.random.normal(kr, (B, C, H, W), dtype=jnp.float32)
    x_imag = jax.random.normal(ki, (B, C, H, W), dtype=jnp.float32)
    x = jax.lax.complex(x_real, x_imag)

    out = cleaky_relu(x)
    jax.block_until_ready(out)

    ref = _reference(x)
    assert out.shape == x.shape and out.dtype == jnp.complex64
    assert jnp.allclose(out, ref, atol=1e-6, rtol=1e-6)
    print("KERNEL_OK")
</pallas_src>

<mosaic_0001>
module attributes {stable_mosaic.version = 11 : i64} {
  func.func @_cleaky_relu_kernel(%arg0: i32, %arg1: memref<16x128xf32, #tpu.memory_space<vmem>>, %arg2: memref<16x128xf32, #tpu.memory_space<vmem>>, %arg3: memref<16x128xf32, #tpu.memory_space<vmem>>, %arg4: memref<16x128xf32, #tpu.memory_space<vmem>>) attributes {dimension_semantics = [#tpu.dimension_semantics<parallel>], iteration_bounds = array<i64: 1>, scalar_prefetch = 0 : i64, scratch_operands = 0 : i64, tpu.core_type = #tpu.core_type<tc>, window_params = [{transform_indices = @transform_0, window_bounds = array<i64: 16, 128>}, {transform_indices = @transform_1, window_bounds = array<i64: 16, 128>}, {transform_indices = @transform_2, window_bounds = array<i64: 16, 128>}, {transform_indices = @transform_3, window_bounds = array<i64: 16, 128>}]} {
    %c0 = arith.constant 0 : index
    %c0_0 = arith.constant 0 : index
    %0 = vector.load %arg1[%c0, %c0_0] : memref<16x128xf32, #tpu.memory_space<vmem>>, vector<16x128xf32>
    %c0_1 = arith.constant 0 : index
    %c0_2 = arith.constant 0 : index
    %1 = vector.load %arg2[%c0_1, %c0_2] : memref<16x128xf32, #tpu.memory_space<vmem>>, vector<16x128xf32>
    %cst = arith.constant 0.00999999977 : f32
    %2 = vector.broadcast %cst : f32 to vector<16x128xf32>
    %3 = arith.mulf %2, %0 : vector<16x128xf32>
    %4 = arith.maximumf %0, %3 : vector<16x128xf32>
    %c0_3 = arith.constant 0 : index
    %c0_4 = arith.constant 0 : index
    %5 = vector.load %arg3[%c0_3, %c0_4] : memref<16x128xf32, #tpu.memory_space<vmem>>, vector<16x128xf32>
    tpu.vector_store %arg3[%c0_3, %c0_4], %4 {strides = array<i32>} : memref<16x128xf32, #tpu.memory_space<vmem>>, vector<16x128xf32>,
    %cst_5 = arith.constant 0.00999999977 : f32
    %6 = vector.broadcast %cst_5 : f32 to vector<16x128xf32>
    %7 = arith.mulf %6, %1 : vector<16x128xf32>
    %8 = arith.maximumf %1, %7 : vector<16x128xf32>
    %c0_6 = arith.constant 0 : index
    %c0_7 = arith.constant 0 : index
    %9 = vector.load %arg4[%c0_6, %c0_7] : memref<16x128xf32, #tpu.memory_space<vmem>>, vector<16x128xf32>
    tpu.vector_store %arg4[%c0_6, %c0_7], %8 {strides = array<i32>} : memref<16x128xf32, #tpu.memory_space<vmem>>, vector<16x128xf32>,
    return
  }
  func.func @transform_0(%arg0: i32) -> (i32, i32) {
    %c0_i32 = arith.constant 0 : i32
    %c0_i32_0 = arith.constant 0 : i32
    return %arg0, %c0_i32 : i32, i32
  }
  func.func @transform_1(%arg0: i32) -> (i32, i32) {
    %c0_i32 = arith.constant 0 : i32
    %c0_i32_0 = arith.constant 0 : i32
    return %arg0, %c0_i32 : i32, i32
  }
  func.func @transform_2(%arg0: i32) -> (i32, i32) {
    %c0_i32 = arith.constant 0 : i32
    %c0_i32_0 = arith.constant 0 : i32
    return %arg0, %c0_i32 : i32, i32
  }
  func.func @transform_3(%arg0: i32) -> (i32, i32) {
    %c0_i32 = arith.constant 0 : i32
    %c0_i32_0 = arith.constant 0 : i32
    return %arg0, %c0_i32 : i32, i32
  }
}

</mosaic_0001>

<bundles_post_ra>
// kernel: custom-call
= control target key start
LH: loop header
LB: loop body
LE: loop exit
PB: predicated region body
PF: predicated region fallthrough
CT: control target
= control target key end

     0   :  { %2 = vsyncpa [#allocation0], 0  ;;  %s47_s0 = inlined_call_operand.hbm [shape: c64[2,4,16,16], index: 0, kind: input, shape index: {}]   ;;  %s48_s1 = inlined_call_operand.vmem [shape: f32[2,4,16,16], index: 1, kind: output, shape index: {}]  }
   0x1   :  { %s3_s8 = sshll.u32 %s48_s1, 4  ;;  %s4_s8 = int_to_ptr.vmem [resolvable:$true] %s3_s8 }
   0x2   :  { %s17_s9 = scalar_lea.vmem %s4_s8, 2048  ;;  %p22_p1 = scmp.lt.s32.totalorder %s4_s8, %s4_s8 }
   0x3   :  { %p18_p0 = scmp.ne.s32.totalorder %s4_s8, %s17_s9  ;;  %p23_p2 = scmp.lt.s32.totalorder %s17_s9, %s17_s9 }
   0x5   :  { %p24_p3 = por %p23_p2, %p22_p1 }
   0x7   :  { %p25_p4 = pnand %p24_p3, %p18_p0 }
   0x9   :  { %28 = shalt.err (!%p25_p4)  }
   0xa   :  { %6 = dma.hbm_to_vmem [thread:$0]  %s47_s0, 2048, %s4_s8, [#allocation0] }
   0xb   :  { %29 = dma.done.wait [#allocation0], 2048  }
   0xc   :  { %30 = vsyncadd [#allocation0], 4294965248 }
   0xd   :  { %8 = vsyncpa [#allocation0], 1 }

// kernel: custom-call.1
= control target key start
LH: loop header
LB: loop body
LE: loop exit
PB: predicated region body
PF: predicated region fallthrough
CT: control target
= control target key end

     0   :  { %s51_s0 = inlined_call_operand.hbm [shape: c64[2,4,16,16], index: 0, kind: input, shape index: {}]   ;;  %s52_s1 = inlined_call_operand.vmem [shape: f32[2,4,16,16], index: 1, kind: output, shape index: {}]  }
   0x1   :  { %s2_s8 = scalar_lea.hbm %s51_s0, 2048 }
   0x2   :  { %3 = vsyncpa [#allocation0], 0  ;;  %s4_s11 = sshll.u32 %s52_s1, 4  ;;  %s5_s11 = int_to_ptr.vmem [resolvable:$true] %s4_s11 }
   0x3   :  { %s20_s12 = scalar_lea.vmem %s5_s11, 2048  ;;  %p25_p1 = scmp.lt.s32.totalorder %s5_s11, %s5_s11 }
   0x4   :  { %p21_p0 = scmp.ne.s32.totalorder %s5_s11, %s20_s12  ;;  %p26_p2 = scmp.lt.s32.totalorder %s20_s12, %s20_s12 }
   0x6   :  { %p27_p3 = por %p26_p2, %p25_p1 }
   0x8   :  { %p28_p4 = pnand %p27_p3, %p21_p0 }
   0xa   :  { %31 = shalt.err (!%p28_p4)  }
   0xb   :  { %7 = dma.hbm_to_vmem [thread:$0]  %s2_s8, 2048, %s5_s11, [#allocation0] }
   0xc   :  { %33 = dma.done.wait [#allocation0], 2048  }
   0xd   :  { %34 = vsyncadd [#allocation0], 4294965248 }
   0xe   :  { %9 = vsyncpa [#allocation0], 1 }

// kernel: custom-call.2
= control target key start
LH: loop header
LB: loop body
LE: loop exit
PB: predicated region body
PF: predicated region fallthrough
CT: control target
= control target key end

     0   :  { %s92_s0 = inlined_call_operand.vmem [shape: f32[2,4,16,16], index: 0, kind: input, shape index: {}]   ;;  %s93_s1 = inlined_call_operand.vmem [shape: f32[2,4,16,16], index: 1, kind: input, shape index: {}]   ;;  %s94_s2 = inlined_call_operand.hbm [shape: c64[2,4,16,16], index: 2, kind: output, shape index: {}]  }
   0x1   :  { %s3_s11 = scalar_lea.hbm %s94_s2, 2048 }
   0x2   :  { %4 = vsyncpa [#allocation0], 0  ;;  %s5_s14 = sshll.u32 %s92_s0, 4  ;;  %s6_s14 = int_to_ptr.vmem [resolvable:$true] %s5_s14 }
   0x3   :  { %s18_s15 = scalar_lea.vmem %s6_s14, 2048  ;;  %p23_p1 = scmp.lt.s32.totalorder %s6_s14, %s6_s14 }
   0x4   :  { %p19_p0 = scmp.ne.s32.totalorder %s6_s14, %s18_s15  ;;  %p24_p2 = scmp.lt.s32.totalorder %s18_s15, %s18_s15 }
   0x6   :  { %p25_p3 = por %p24_p2, %p23_p1 }
   0x8   :  { %p26_p4 = pnand %p25_p3, %p19_p0 }
   0xa   :  { %29 = shalt.err (!%p26_p4)  }
   0xb   :  { %8 = dma.vmem_to_hbm [thread:$0]  %s6_s14, 2048, %s94_s2, [#allocation0] }
   0xc   :  { %61 = dma.done.wait [#allocation0], 2048  }
   0xd   :  { %62 = vsyncadd [#allocation0], 4294965248 }
   0xe   :  { %10 = vsyncpa [#allocation0], 1 }
   0xf   :  { %11 = vsyncpa [#allocation1], 0  ;;  %s12_s0 = sshll.u32 %s93_s1, 4  ;;  %s13_s0 = int_to_ptr.vmem [resolvable:$true] %s12_s0 }
  0x10   :  { %s38_s20 = scalar_lea.vmem %s13_s0, 2048  ;;  %p43_p6 = scmp.lt.s32.totalorder %s13_s0, %s13_s0 }
  0x11   :  { %p39_p5 = scmp.ne.s32.totalorder %s13_s0, %s38_s20  ;;  %p44_p7 = scmp.lt.s32.totalorder %s38_s20, %s38_s20 }
  0x13   :  { %p45_p8 = por %p44_p7, %p43_p6 }
  0x15   :  { %p46_p9 = pnand %p45_p8, %p39_p5 }
  0x17   :  { %49 = shalt.err (!%p46_p9)  }
  0x18   :  { %15 = dma.vmem_to_hbm [thread:$0]  %s13_s0, 2048, %s3_s11, [#allocation1] }
  0x19   :  { %63 = dma.done.wait [#allocation1], 2048  }
  0x1a   :  { %64 = vsyncadd [#allocation1], 4294965248 }
  0x1b   :  { %17 = vsyncpa [#allocation1], 1 }

// kernel: cleaky_relu.1
= control target key start
LH: loop header
LB: loop body
LE: loop exit
PB: predicated region body
PF: predicated region fallthrough
CT: control target
= control target key end

     0   :  { %s81_s0 = inlined_call_operand.vmem [shape: f32[16,128], index: 0, kind: input, shape index: {}]   ;;  %s82_s1 = inlined_call_operand.vmem [shape: f32[16,128], index: 1, kind: input, shape index: {}]   ;;  %s83_s2 = inlined_call_operand.vmem [shape: f32[16,128], index: 2, kind: output, shape index: {0}]   ;;  %s84_s3 = inlined_call_operand.vmem [shape: f32[16,128], index: 3, kind: output, shape index: {1}]  }
   0x1   :  { %v13_v0 = vld [vmem:[%s81_s0] sm:$0xff]  ;;  %v14_v1 = vld [vmem:[%s81_s0 + $0x8] sm:$0xff] }
   0x2   :  { %v15_v2 = vld [vmem:[%s82_s1] sm:$0xff]  ;;  %v17_v3 = vmul.f32 0.01, %v13_v0  ;;  %v18_v4 = vmul.f32 0.01, %v14_v1  ;;  %v16_v6 = vld [vmem:[%s82_s1 + $0x8] sm:$0xff] }
   0x3   :  { %v23_v5 = vmul.f32 0.01, %v15_v2  ;;  %v24_v10 = vmul.f32 0.01, %v16_v6 }
   0x4   :  { %v19_v7 = vmax.f32 %v13_v0, %v17_v3  ;;  %v20_v8 = vmax.f32 %v14_v1, %v18_v4 }
   0x5   :  { %v25_v9 = vmax.f32 %v15_v2, %v23_v5  ;;  %v26_v11 = vmax.f32 %v16_v6, %v24_v10 }
   0x6   :  { %21 = vst [vmem:[%s83_s2] sm:$0xff] %v19_v7  ;;  %22 = vst [vmem:[%s83_s2 + $0x8] sm:$0xff] %v20_v8 }
   0x7   :  { %27 = vst [vmem:[%s84_s3] sm:$0xff] %v25_v9  ;;  %28 = vst [vmem:[%s84_s3 + $0x8] sm:$0xff] %v26_v11 }

</bundles_post_ra>
